<compile_context>
chip_gen: v7x
topology: tpu7x:2x2x1
jax: 0.10.0
libtpu: 0.0.40
codegen_flags: <defaults>
</compile_context>

<pallas_src>
import jax
import jax.numpy as jnp
from jax.experimental import pallas as pl
from jax.experimental.pallas import tpu as pltpu

OUT_PAD = 128  # lane-dense output width (padded final-layer columns are zeros)


def mlp_kernel(x_ref, w0_ref, b0_ref, w1_ref, b1_ref, w2_ref, b2_ref, o_ref):
    x = x_ref[...]                      # [TB, D_in]

    # ---- hidden layer 0: Linear + ReLU + residual (shapes match: D_in == hidden0) ----
    h = jnp.dot(x, w0_ref[...], preferred_element_type=jnp.float32) + b0_ref[...]
    h = jnp.maximum(h, 0.0)
    h = h + x

    # ---- hidden layer 1: Linear + ReLU + residual (shapes match: hidden0 == hidden1) ----
    h2 = jnp.dot(h, w1_ref[...], preferred_element_type=jnp.float32) + b1_ref[...]
    h2 = jnp.maximum(h2, 0.0)
    h2 = h2 + h

    # ---- output layer: Linear + Sigmoid (padded to 128 lanes; extra lanes discarded) ----
    out = jnp.dot(h2, w2_ref[...], preferred_element_type=jnp.float32) + b2_ref[...]
    o_ref[...] = jax.nn.sigmoid(out).astype(o_ref.dtype)


def mlp_forward(x, params, *, block_b=4096):
    """x: [B, input_dim] f32.  params: dict of weights/biases (see init_params)."""
    B, d_in = x.shape
    h0 = params["w0"].shape[1]
    h1 = params["w1"].shape[1]
    out_dim = params["w2"].shape[1]

    # Lane-dense output: zero-pad the final layer to OUT_PAD output columns.
    w2p = jnp.zeros((h1, OUT_PAD), jnp.float32).at[:, :out_dim].set(params["w2"])
    b2p = jnp.zeros((1, OUT_PAD), jnp.float32).at[:, :out_dim].set(params["b2"])

    # Batch tile: large (amortizes ~0.35 us/step overhead) but bounded by VMEM;
    # second-to-last block dim must be a multiple of 8.
    tb = min(block_b, max(8, ((B + 7) // 8) * 8))
    Bp = ((B + tb - 1) // tb) * tb
    xp = x if Bp == B else jnp.pad(x, ((0, Bp - B), (0, 0)))

    grid = (Bp // tb,)

    def resident(shape):
        # Same block index every grid step -> DMA'd once, stays resident in VMEM.
        return pl.BlockSpec(shape, lambda i: (0, 0))

    cost = pl.CostEstimate(
        flops=2 * Bp * (d_in * h0 + h0 * h1 + h1 * OUT_PAD),
        transcendentals=Bp * OUT_PAD,                 # sigmoid
        bytes_accessed=Bp * (d_in + OUT_PAD) * 4,     # streamed x + padded out
    )

    out_padded = pl.pallas_call(
        mlp_kernel,
        out_shape=jax.ShapeDtypeStruct((Bp, OUT_PAD), jnp.float32),
        grid=grid,
        in_specs=[
            pl.BlockSpec((tb, d_in), lambda i: (i, 0)),   # x streamed per batch tile
            resident((d_in, h0)), resident((1, h0)),
            resident((h0, h1)), resident((1, h1)),
            resident((h1, OUT_PAD)), resident((1, OUT_PAD)),
        ],
        out_specs=pl.BlockSpec((tb, OUT_PAD), lambda i: (i, 0)),
        compiler_params=pltpu.CompilerParams(
            dimension_semantics=("parallel",),
        ),
        cost_estimate=cost,
    )(xp, params["w0"], params["b0"], params["w1"], params["b1"], w2p, b2p)

    return out_padded[:B, :out_dim]


def init_params(key, input_dim, hidden, out_dim):
    k0, k1, k2 = jax.random.split(key, 3)

    def kaiming_uniform(k, fan_in, fan_out):
        # approx. PyTorch nn.Linear default weight init (kaiming uniform, a=sqrt(5))
        bound = (1.0 / fan_in) ** 0.5
        # stored as [in, out] (transposed vs. torch [out, in])
        return jax.random.uniform(k, (fan_in, fan_out), jnp.float32, -bound, bound)

    return {
        "w0": kaiming_uniform(k0, input_dim, hidden[0]),
        "b0": jnp.zeros((1, hidden[0]), jnp.float32),   # torch.nn.init.zeros_ (activation given)
        "w1": kaiming_uniform(k1, hidden[0], hidden[1]),
        "b1": jnp.zeros((1, hidden[1]), jnp.float32),
        "w2": kaiming_uniform(k2, hidden[1], out_dim),
        "b2": jnp.zeros((1, out_dim), jnp.float32),
    }


def reference_forward(x, params):
    """Pure-JAX reference mirroring the PyTorch Model.forward control flow."""
    feats_init = x
    h = jnp.maximum(x @ params["w0"] + params["b0"], 0.0)
    if h.shape == feats_init.shape:
        h = h + feats_init
        feats_init = h
    h2 = jnp.maximum(h @ params["w1"] + params["b1"], 0.0)
    if h2.shape == feats_init.shape:
        h2 = h2 + feats_init
    return jax.nn.sigmoid(h2 @ params["w2"] + params["b2"])


if __name__ == "__main__":
    B, IN_DIM, HIDDEN, OUT_DIM = 8, 32, [32, 32], 8

    key = jax.random.PRNGKey(0)
    kx, kp = jax.random.split(key)
    x = jax.random.normal(kx, (B, IN_DIM), jnp.float32)
    params = init_params(kp, IN_DIM, HIDDEN, OUT_DIM)

    out = mlp_forward(x, params)
    out = jax.block_until_ready(out)

    ref = reference_forward(x, params)
    assert out.shape == (B, OUT_DIM)
    assert jnp.allclose(out, ref, atol=1e-5, rtol=1e-5), "mismatch vs. reference"

    print("KERNEL_OK")
</pallas_src>

<mosaic_0001>
module attributes {stable_mosaic.version = 11 : i64} {
  func.func @mlp_kernel(%arg0: i32, %arg1: memref<8x32xf32, #tpu.memory_space<vmem>>, %arg2: memref<32x32xf32, #tpu.memory_space<vmem>>, %arg3: memref<1x32xf32, #tpu.memory_space<vmem>>, %arg4: memref<32x32xf32, #tpu.memory_space<vmem>>, %arg5: memref<1x32xf32, #tpu.memory_space<vmem>>, %arg6: memref<32x128xf32, #tpu.memory_space<vmem>>, %arg7: memref<1x128xf32, #tpu.memory_space<vmem>>, %arg8: memref<8x128xf32, #tpu.memory_space<vmem>>) attributes {dimension_semantics = [#tpu.dimension_semantics<parallel>], iteration_bounds = array<i64: 1>, scalar_prefetch = 0 : i64, scratch_operands = 0 : i64, tpu.core_type = #tpu.core_type<tc>, window_params = [{transform_indices = @transform_0, window_bounds = array<i64: 8, 32>}, {pipeline_mode = #tpu.pipeline_mode<synchronous>, transform_indices = @transform_1, window_bounds = array<i64: 32, 32>}, {pipeline_mode = #tpu.pipeline_mode<synchronous>, transform_indices = @transform_2, window_bounds = array<i64: 1, 32>}, {pipeline_mode = #tpu.pipeline_mode<synchronous>, transform_indices = @transform_3, window_bounds = array<i64: 32, 32>}, {pipeline_mode = #tpu.pipeline_mode<synchronous>, transform_indices = @transform_4, window_bounds = array<i64: 1, 32>}, {pipeline_mode = #tpu.pipeline_mode<synchronous>, transform_indices = @transform_5, window_bounds = array<i64: 32, 128>}, {pipeline_mode = #tpu.pipeline_mode<synchronous>, transform_indices = @transform_6, window_bounds = array<i64: 1, 128>}, {transform_indices = @transform_7, window_bounds = array<i64: 8, 128>}]} {
    %c0 = arith.constant 0 : index
    %c0_0 = arith.constant 0 : index
    %0 = vector.load %arg1[%c0, %c0_0] : memref<8x32xf32, #tpu.memory_space<vmem>>, vector<8x32xf32>
    %c0_1 = arith.constant 0 : index
    %c0_2 = arith.constant 0 : index
    %1 = vector.load %arg2[%c0_1, %c0_2] : memref<32x32xf32, #tpu.memory_space<vmem>>, vector<32x32xf32>
    %cst = arith.constant dense<0.000000e+00> : vector<8x32xf32>
    %2 = tpu.matmul %0, %1, %cst {dimension_numbers = #tpu.dot_dimension_numbers<[1], [0], [0], [1], [0, 0, 1, 1], [], []>} : vector<8x32xf32>, vector<32x32xf32>, vector<8x32xf32> -> vector<8x32xf32>
    %c0_3 = arith.constant 0 : index
    %c0_4 = arith.constant 0 : index
    %3 = vector.load %arg3[%c0_3, %c0_4] : memref<1x32xf32, #tpu.memory_space<vmem>>, vector<1x32xf32>
    %4 = vector.broadcast %3 : vector<1x32xf32> to vector<8x32xf32>
    %5 = arith.addf %2, %4 : vector<8x32xf32>
    %cst_5 = arith.constant 0.000000e+00 : f32
    %6 = vector.broadcast %cst_5 : f32 to vector<8x32xf32>
    %7 = arith.maximumf %5, %6 : vector<8x32xf32>
    %8 = arith.addf %7, %0 : vector<8x32xf32>
    %c0_6 = arith.constant 0 : index
    %c0_7 = arith.constant 0 : index
    %9 = vector.load %arg4[%c0_6, %c0_7] : memref<32x32xf32, #tpu.memory_space<vmem>>, vector<32x32xf32>
    %cst_8 = arith.constant dense<0.000000e+00> : vector<8x32xf32>
    %10 = tpu.matmul %8, %9, %cst_8 {dimension_numbers = #tpu.dot_dimension_numbers<[1], [0], [0], [1], [0, 0, 1, 1], [], []>} : vector<8x32xf32>, vector<32x32xf32>, vector<8x32xf32> -> vector<8x32xf32>
    %c0_9 = arith.constant 0 : index
    %c0_10 = arith.constant 0 : index
    %11 = vector.load %arg5[%c0_9, %c0_10] : memref<1x32xf32, #tpu.memory_space<vmem>>, vector<1x32xf32>
    %12 = vector.broadcast %11 : vector<1x32xf32> to vector<8x32xf32>
    %13 = arith.addf %10, %12 : vector<8x32xf32>
    %cst_11 = arith.constant 0.000000e+00 : f32
    %14 = vector.broadcast %cst_11 : f32 to vector<8x32xf32>
    %15 = arith.maximumf %13, %14 : vector<8x32xf32>
    %16 = arith.addf %15, %8 : vector<8x32xf32>
    %c0_12 = arith.constant 0 : index
    %c0_13 = arith.constant 0 : index
    %17 = vector.load %arg6[%c0_12, %c0_13] : memref<32x128xf32, #tpu.memory_space<vmem>>, vector<32x128xf32>
    %cst_14 = arith.constant dense<0.000000e+00> : vector<8x128xf32>
    %18 = tpu.matmul %16, %17, %cst_14 {dimension_numbers = #tpu.dot_dimension_numbers<[1], [0], [0], [1], [0, 0, 1, 1], [], []>} : vector<8x32xf32>, vector<32x128xf32>, vector<8x128xf32> -> vector<8x128xf32>
    %c0_15 = arith.constant 0 : index
    %c0_16 = arith.constant 0 : index
    %19 = vector.load %arg7[%c0_15, %c0_16] : memref<1x128xf32, #tpu.memory_space<vmem>>, vector<1x128xf32>
    %20 = vector.broadcast %19 : vector<1x128xf32> to vector<8x128xf32>
    %21 = arith.addf %18, %20 : vector<8x128xf32>
    %22 = arith.negf %21 : vector<8x128xf32>
    %23 = math.exp %22 : vector<8x128xf32>
    %cst_17 = arith.constant 1.000000e+00 : f32
    %24 = vector.broadcast %cst_17 : f32 to vector<8x128xf32>
    %25 = arith.addf %24, %23 : vector<8x128xf32>
    %26 = arith.divf %24, %25 : vector<8x128xf32>
    %c0_18 = arith.constant 0 : index
    %c0_19 = arith.constant 0 : index
    %27 = vector.load %arg8[%c0_18, %c0_19] : memref<8x128xf32, #tpu.memory_space<vmem>>, vector<8x128xf32>
    tpu.vector_store %arg8[%c0_18, %c0_19], %26 {strides = array<i32>} : memref<8x128xf32, #tpu.memory_space<vmem>>, vector<8x128xf32>,
    return
  }
  func.func @transform_0(%arg0: i32) -> (i32, i32) {
    %c0_i32 = arith.constant 0 : i32
    %c0_i32_0 = arith.constant 0 : i32
    return %arg0, %c0_i32 : i32, i32
  }
  func.func @transform_1(%arg0: i32) -> (i32, i32) {
    %c0_i32 = arith.constant 0 : i32
    %c0_i32_0 = arith.constant 0 : i32
    %c0_i32_1 = arith.constant 0 : i32
    return %c0_i32, %c0_i32_0 : i32, i32
  }
  func.func @transform_2(%arg0: i32) -> (i32, i32) {
    %c0_i32 = arith.constant 0 : i32
    %c0_i32_0 = arith.constant 0 : i32
    %c0_i32_1 = arith.constant 0 : i32
    return %c0_i32, %c0_i32_0 : i32, i32
  }
  func.func @transform_3(%arg0: i32) -> (i32, i32) {
    %c0_i32 = arith.constant 0 : i32
    %c0_i32_0 = arith.constant 0 : i32
    %c0_i32_1 = arith.constant 0 : i32
    return %c0_i32, %c0_i32_0 : i32, i32
  }
  func.func @transform_4(%arg0: i32) -> (i32, i32) {
    %c0_i32 = arith.constant 0 : i32
    %c0_i32_0 = arith.constant 0 : i32
    %c0_i32_1 = arith.constant 0 : i32
    return %c0_i32, %c0_i32_0 : i32, i32
  }
  func.func @transform_5(%arg0: i32) -> (i32, i32) {
    %c0_i32 = arith.constant 0 : i32
    %c0_i32_0 = arith.constant 0 : i32
    %c0_i32_1 = arith.constant 0 : i32
    return %c0_i32, %c0_i32_0 : i32, i32
  }
  func.func @transform_6(%arg0: i32) -> (i32, i32) {
    %c0_i32 = arith.constant 0 : i32
    %c0_i32_0 = arith.constant 0 : i32
    %c0_i32_1 = arith.constant 0 : i32
    return %c0_i32, %c0_i32_0 : i32, i32
  }
  func.func @transform_7(%arg0: i32) -> (i32, i32) {
    %c0_i32 = arith.constant 0 : i32
    %c0_i32_0 = arith.constant 0 : i32
    return %arg0, %c0_i32 : i32, i32
  }
}

</mosaic_0001>

<bundles_post_ra>
// kernel: tpu_custom_call.1
= control target key start
LH: loop header
LB: loop body
LE: loop exit
PB: predicated region body
PF: predicated region fallthrough
CT: control target
= control target key end

     0   :  { %12 = vsyncpa [#allocation3], 0  ;;  %s701_s0 = inlined_call_operand.hbm [shape: f32[8,32], index: 0, kind: input, shape index: {}]   ;;  %s702_s1 = inlined_call_operand.hbm [shape: f32[32,32], index: 1, kind: input, shape index: {}]   ;;  %s703_s2 = inlined_call_operand.vmem [shape: f32[1,32], index: 2, kind: input, shape index: {}]   ;;  %s704_s3 = inlined_call_operand.hbm [shape: f32[32,32], index: 3, kind: input, shape index: {}]   ;;  %s705_s4 = inlined_call_operand.vmem [shape: f32[1,32], index: 4, kind: input, shape index: {}]   ;;  %s706_s5 = inlined_call_operand.hbm [shape: f32[32,128], index: 5, kind: input, shape index: {}]   ;;  %s707_s6 = inlined_call_operand.vmem [shape: f32[1,128], index: 6, kind: input, shape index: {}]   ;;  %s708_s7 = inlined_call_operand.hbm [shape: f32[8,128], index: 7, kind: output, shape index: {}]  }
   0x1   :  { %13 = vsyncpa [#allocation6], 0 }
   0x2   :  { %14 = vsyncpa [#allocation9], 0 }
   0x3   :  { %15 = vsyncpa [#allocation4], 0  ;;  %s567_s24 = smov [#allocation5]   ;;  %s449_s28 = scalar_lea.hbm %s702_s1, 512 }
   0x4   :  { %s31_s25 = sshll.u32 %s567_s24, 4  ;;  %p450_p0 = scmp.ne.s32.totalorder %s702_s1, %s449_s28  ;;  %s32_s25 = int_to_ptr.vmem [resolvable:$true] %s31_s25 }
   0x5   :  { %p453_p1 = scmp.lt.u32.totalorder %s449_s28, %s702_s1 }
   0x7   :  { %p455_p2 = pnand %p453_p1, %p450_p0 }
   0x9   :  { %458 = shalt.err (!%p455_p2)
}
   0xa   :  { %s459_s10 = scalar_lea.vmem %s32_s25, 512  ;;  %p464_p4 = scmp.lt.s32.totalorder %s32_s25, %s32_s25 }
   0xb   :  { %p460_p3 = scmp.ne.s32.totalorder %s32_s25, %s459_s10  ;;  %p465_p5 = scmp.lt.s32.totalorder %s459_s10, %s459_s10 }
   0xd   :  { %p466_p6 = por %p465_p5, %p464_p4 }
   0xf   :  { %p467_p7 = pnand %p466_p6, %p460_p3 }
  0x11   :  { %470 = shalt.err (!%p467_p7)
}
  0x12   :  { %s568_s11 = smov 128   ;;  %s569_s12 = smov 8  }
  0x13   :  { %37 = dma.hbm_to_vmem [thread:$0]  %s702_s1, 512, %s32_s25, [#allocation6], %s568_s11, %s568_s11, %s569_s12  }
  0x14   :  { %s570_s15 = smov [#allocation2]   ;;  %s571_s17 = smov [#allocation7]  }
  0x15   :  { %s22_s16 = sshll.u32 %s570_s15, 4  ;;  %s45_s18 = sshll.u32 %s571_s17, 4  ;;  %s23_s16 = int_to_ptr.vmem [resolvable:$true] %s22_s16  ;;  %s46_s18 = int_to_ptr.vmem [resolvable:$true] %s45_s18 }
  0x16   :  { %s471_s21 = scalar_lea.hbm %s701_s0, 128 }
  0x17   :  { %p472_p8 = scmp.ne.s32.totalorder %s701_s0, %s471_s21  ;;  %p475_p9 = scmp.lt.u32.totalorder %s471_s21, %s701_s0 }
  0x19   :  { %p477_p10 = pnand %p475_p9, %p472_p8 }
  0x1b   :  { %480 = shalt.err (!%p477_p10)
}
  0x1c   :  { %s481_s1 = scalar_lea.vmem %s23_s16, 128  ;;  %p486_p12 = scmp.lt.s32.totalorder %s23_s16, %s23_s16 }
  0x1d   :  { %p482_p11 = scmp.ne.s32.totalorder %s23_s16, %s481_s1  ;;  %p487_p13 = scmp.lt.s32.totalorder %s481_s1, %s481_s1 }
  0x1f   :  { %p488_p0 = por %p487_p13, %p486_p12 }
  0x21   :  { %p489_p1 = pnand %p488_p0, %p482_p11 }
  0x23   :  { %492 = shalt.err (!%p489_p1)
}
  0x24   :  { %25 = dma.hbm_to_vmem [thread:$0]  %s701_s0, 128, %s23_s16, [#allocation3]  }
  0x25   :  { %s493_s30 = scalar_lea.hbm %s704_s3, 512 }
  0x26   :  { %p494_p2 = scmp.ne.s32.totalorder %s704_s3, %s493_s30  ;;  %p497_p3 = scmp.lt.u32.totalorder %s493_s30, %s704_s3 }
  0x28   :  { %p499_p4 = pnand %p497_p3, %p494_p2 }
  0x2a   :  { %502 = shalt.err (!%p499_p4)
}
  0x2b   :  { %s503_s14 = scalar_lea.vmem %s46_s18, 512  ;;  %p508_p6 = scmp.lt.s32.totalorder %s46_s18, %s46_s18 }
  0x2c   :  { %p504_p5 = scmp.ne.s32.totalorder %s46_s18, %s503_s14  ;;  %p509_p7 = scmp.lt.s32.totalorder %s503_s14, %s503_s14 }
  0x2e   :  { %p510_p8 = por %p509_p7, %p508_p6 }
  0x30   :  { %p511_p9 = pnand %p510_p8, %p504_p5 }
  0x32   :  { %514 = shalt.err (!%p511_p9)
}
  0x33   :  { %51 = dma.hbm_to_vmem [thread:$0]  %s704_s3, 512, %s46_s18, [#allocation6], %s568_s11, %s568_s11, %s569_s12  }
  0x34   :  { %s572_s16 = smov [#allocation8]   ;;  %s515_s21 = scalar_lea.hbm %s706_s5, 512 }
  0x35   :  { %s59_s17 = sshll.u32 %s572_s16, 4  ;;  %p516_p10 = scmp.ne.s32.totalorder %s706_s5, %s515_s21  ;;  %s60_s17 = int_to_ptr.vmem [resolvable:$true] %s59_s17 }
  0x36   :  { %p519_p11 = scmp.lt.u32.totalorder %s515_s21, %s706_s5 }
  0x38   :  { %p521_p12 = pnand %p519_p11, %p516_p10 }
  0x3a   :  { %524 = shalt.err (!%p521_p12)
}
  0x3b   :  { %s525_s1 = scalar_lea.vmem %s60_s17, 512  ;;  %p530_p0 = scmp.lt.s32.totalorder %s60_s17, %s60_s17 }
  0x3c   :  { %p526_p13 = scmp.ne.s32.totalorder %s60_s17, %s525_s1  ;;  %p531_p1 = scmp.lt.s32.totalorder %s525_s1, %s525_s1 }
  0x3e   :  { %p532_p2 = por %p531_p1, %p530_p0 }
  0x40   :  { %p533_p3 = pnand %p532_p2, %p526_p13 }
  0x42   :  { %536 = shalt.err (!%p533_p3)
}
  0x43   :  { %65 = dma.hbm_to_vmem [thread:$0]  %s706_s5, 512, %s60_s17, [#allocation9], %s568_s11, %s568_s11, %s569_s12  }
  0x44   :  { %559 = dma.done.wait [#allocation3], 128  }
  0x45   :  { %560 = vsyncadd [#allocation3], 4294967168 }
  0x46   :  { %561 = dma.done.wait [#allocation6], 1024  }
  0x47   :  { %562 = vsyncadd [#allocation6], 4294966272 }
  0x48   :  { %563 = dma.done.wait [#allocation9], 512  }
  0x49   :  { %564 = vsyncadd [#allocation9], 4294966784  ;;  %v573_v0 = vmov 0.0|0.0   ;;  %vm574_vm0 = vmmov 0   ;;  %v575_v1 = vmov 0.0   ;;  %v81_v2 = vld [vmem:[#allocation5] sm:$0xff] }
  0x4a   :  { %417 = vmatprep.subr.bf16.mxu0 %v573_v0  ;;  %392 = vmatprep.mubr.msk.f32.mxu0 %vm574_vm0, %v575_v1  ;;  %v82_v3 = vld [vmem:[#allocation5 + $0x8] sm:$0xff]  ;;  %v83_v4 = vld [vmem:[#allocation5 + $0x10] sm:$0xff]  ;;  %v84_v6 = vld [vmem:[#allocation5 + $0x18] sm:$0xff]  ;;  %vm92_vm1 = vcmask 261120  }
  0x4b   :  { %423 = vmatprep.subr.bf16.mxu1 %v573_v0  ;;  %403 = vmatprep.mubr.msk.f32.mxu1 %vm574_vm0, %v575_v1  ;;  %v418_v5 = vpack.c.bf16 %v82_v3, %v81_v2  ;;  %v421_v7 = vpack.c.bf16 %v84_v6, %v83_v4  ;;  %v80_v8 = vld [vmem:[#allocation2] sm:$0xff]  ;;  %v168_v9 = vld [vmem:[#allocation7] sm:$0xff]  ;;  %v169_v10 = vld [vmem:[#allocation7 + $0x8] sm:$0xff] }
  0x4c   :  { %v424_v11 = vpack.c.bf16 %v169_v10, %v168_v9  ;;  %v170_v12 = vld [vmem:[#allocation7 + $0x10] sm:$0xff]  ;;  %v171_v13 = vld [vmem:[#allocation7 + $0x18] sm:$0xff]  ;;  %v254_v21 = vld [vmem:[#allocation8] sm:$0xff] }
  0x4d   :  { %419 = vmatpush3.bf16.msra.mxu0 %v418_v5  ;;  %v427_v14 = vpack.c.bf16 %v171_v13, %v170_v12  ;;  %v362_v15 = vld [vmem:[%s703_s2] ss:$0 sm:$0xff]  ;;  %v255_v22 = vld [vmem:[#allocation8 + $0x8] sm:$0xff]  ;;  %v256_v24 = vld [vmem:[#allocation8 + $0x10] sm:$0xff] }
  0x4e   :  { %420 = vmatprep.subr.bf16.mxu0 %v573_v0  ;;  %425 = vmatpush3.bf16.msra.mxu1 %v424_v11  ;;  %v430_v23 = vpack.c.bf16 %v255_v22, %v254_v21  ;;  %v257_v25 = vld [vmem:[#allocation8 + $0x18] sm:$0xff] }
  0x4f   :  { %426 = vmatprep.subr.bf16.mxu1 %v573_v0  ;;  %v433_v26 = vpack.c.bf16 %v257_v25, %v256_v24  ;;  %v364_v27 = vld [vmem:[%s705_s4] ss:$0 sm:$0xff]  ;;  %s576_s4 = smov [#allocation10]  }
  0x50   :  { %v366_v33 = vld [vmem:[%s707_s6] ss:$0 sm:$0xff]  ;;  %s351_s28 = sshll.u32 %s576_s4, 4  ;;  %s352_s28 = int_to_ptr.vmem [resolvable:$true] %s351_s28 }
  0x51   :  { %422 = vmatpush3.bf16.msra.mxu0 %v421_v7  ;;  %s537_s29 = scalar_lea.vmem %s352_s28, 128  ;;  %p542_p5 = scmp.lt.s32.totalorder %s352_s28, %s352_s28 }
  0x52   :  { %429 = vmatprep.subr.bf16.mxu0 %v573_v0  ;;  %428 = vmatpush3.bf16.msra.mxu1 %v427_v14  ;;  %p538_p4 = scmp.ne.s32.totalorder %s352_s28, %s537_s29  ;;  %p543_p6 = scmp.lt.s32.totalorder %s537_s29, %s537_s29 }
  0x54   :  { %393 = vmatmul.mubr.msk.f32.vlgmr.msra.gmra.mrb[0].mxu0 %vm92_vm1, %v80_v8  ;;  %p544_p7 = por %p543_p6, %p542_p5 }
  0x55   :  { %414 = vmatprep.mubr.msk.f32.mxu0 %vm574_vm0, %v575_v1  ;;  %431 = vmatpush3.bf16.msra.mxu0 %v430_v23 }
  0x56   :  { %432 = vmatprep.subr.bf16.mxu0 %v573_v0  ;;  %p545_p8 = pnand %p544_p7, %p538_p4 }
  0x59   :  { %434 = vmatpush3.bf16.msra.mxu0 %v433_v26 }
 0x127   :  { %v162_v16 = vpop.f32.mrb[0].mxu0 }
 0x128   :  { %v163_v17 = vadd.f32 %v362_v15, %v162_v16  ;;  %v394_v18 = vpop.f32.mrb[1].mxu0 }
 0x12a   :  { %v166_v19 = vmax.f32 %v163_v17, 0.0 }
 0x12c   :  { %v167_v20 = vadd.f32 %v166_v19, %v80_v8 }
 0x12e   :  { %404 = vmatmul.mubr.msk.f32.vlgmr.msra.gmra.mrb[0].mxu1 %vm92_vm1, %v167_v20 }
 0x201   :  { %v248_v28 = vpop.f32.mrb[0].mxu1 }
 0x202   :  { %v249_v29 = vadd.f32 %v364_v27, %v248_v28  ;;  %v405_v30 = vpop.f32.mrb[1].mxu1 }
 0x204   :  { %v252_v31 = vmax.f32 %v249_v29, 0.0 }
 0x206   :  { %v253_v32 = vadd.f32 %v252_v31, %v167_v20 }
 0x208   :  { %415 = vmatmul.mubr.msk.f32.vlgmr.msra.gmra.mrb[2].mxu0 %vm92_vm1, %v253_v32 }
 0x2db   :  { %v334_v34 = vpop.f32.mrb[2].mxu0 }
 0x2dc   :  { %v335_v35 = vadd.f32 %v366_v33, %v334_v34  ;;  %v416_v36 = vpop.f32.mrb[3].mxu0 }
 0x2de   :  { %v368_v37 = vmul.f32 -1.442695, %v335_v35 }
 0x2e0   :  { %445 = vpow2.f32 %v368_v37 }
 0x2ea   :  { %v446_v38 = vpop.eup %445 }
 0x2eb   :  { %v341_v39 = vadd.f32 1.0, %v446_v38 }
 0x2ed   :  { %447 = vrcp.f32 %v341_v39 }
 0x2f7   :  { %v448_v40 = vpop.eup %447 }
 0x2f8   :  { %344 = vst [vmem:[#allocation10] sm:$0xff] %v448_v40 }
 0x2f9   :  { %548 = shalt.err (!%p545_p8)
}
 0x2fa   :  { %s549_s8 = scalar_lea.hbm %s708_s7, 128 }
 0x2fb   :  { %p550_p9 = scmp.ne.s32.totalorder %s708_s7, %s549_s8  ;;  %p553_p10 = scmp.lt.u32.totalorder %s549_s8, %s708_s7 }
 0x2fd   :  { %p555_p11 = pnand %p553_p10, %p550_p9 }
 0x2ff   :  { %558 = shalt.err (!%p555_p11)
}
 0x300   :  { %354 = dma.vmem_to_hbm [thread:$0]  %s352_s28, 128, %s708_s7, [#allocation4]  }
 0x301   :  { %565 = dma.done.wait [#allocation4], 128  }
 0x302   :  { %566 = vsyncadd [#allocation4], 4294967168 }
 0x303   :  { %358 = vsyncpa [#allocation3], 1 }
 0x304   :  { %359 = vsyncpa [#allocation6], 1 }
 0x305   :  { %360 = vsyncpa [#allocation9], 1 }
 0x306   :  { %361 = vsyncpa [#allocation4], 1 }

</bundles_post_ra>
